<compile_context>
chip_gen: v6e
topology: v6e:2x2x1
jax: 0.10.0
libtpu: 0.0.40
codegen_flags: <defaults>
</compile_context>

<pallas_src>
import functools

import jax
import jax.numpy as jnp
from jax.experimental import pallas as pl
from jax.experimental.pallas import tpu as pltpu


_LANE = 128                     # lane width (last-dim tiling)
_MXU_DTYPE = jnp.bfloat16       # MXU operand dtype; accumulation is f32
_BN_EPS = 1e-5


# ---------------------------------------------------------------------------
# Device-derived configuration
# ---------------------------------------------------------------------------
@functools.lru_cache(maxsize=None)
def _device_kind() -> str:
    try:
        return jax.devices()[0].device_kind.lower()
    except Exception:
        return ""


@functools.lru_cache(maxsize=None)
def _vmem_capacity_bytes() -> int:
    try:
        cap = int(pltpu.get_tpu_info().vmem_capacity_bytes)
        if cap > 0:
            return cap
    except Exception:
        pass
    kind = _device_kind()
    if "v7" in kind:
        return 64 * 1024 * 1024
    if "v5" in kind or "v6" in kind:
        return 128 * 1024 * 1024
    return 64 * 1024 * 1024      # conservative default when unknown


def _vmem_budgets():
    cap = _vmem_capacity_bytes()
    block_budget = cap // 2                                   # pipelined blocks
    vmem_limit = min((cap * 3) // 4, 100 * 1024 * 1024)       # scoped-VMEM limit
    return block_budget, vmem_limit


def _elementwise_dtype():
    kind = _device_kind()
    if "v6" in kind or "v7" in kind:
        return jnp.bfloat16      # bf16 VPU/EUP available
    return jnp.float32           # v5e (and unknown) have no bf16 EUP/VALU


def _min_grid_steps_parallel():
    # v7x shards "parallel" grid axes across 2 TensorCores; keep >= 2 steps
    # per core so BlockSpec double-buffering has something to overlap.
    return 4 if "v7" in _device_kind() else 2


# ---------------------------------------------------------------------------
# Parameter padding helpers (weights only; x traffic unchanged)
# ---------------------------------------------------------------------------
def _pad_axis_to(a, axis, mult):
    pad = (-a.shape[axis]) % mult
    if pad == 0:
        return a
    widths = [(0, 0)] * a.ndim
    widths[axis] = (0, pad)
    return jnp.pad(a, widths)


def _pad_intermediate(w1t, b1, w2t):
    """Pad the intermediate dim I to a lane multiple (weights only).

    Extra h columns are tanh(0 + 0) = 0 and multiply zero rows of w2t, so the
    logits are unchanged.
    """
    w1t = _pad_axis_to(w1t, 1, _LANE)
    b1 = _pad_axis_to(b1, 1, _LANE)
    w2t = _pad_axis_to(w2t, 0, _LANE)
    return w1t, b1, w2t


# ---------------------------------------------------------------------------
# Block-size selection
# ---------------------------------------------------------------------------
def _pick_block_batch(B, T, C, I_pad, *, block_budget, min_grid_steps):
    """Samples-per-grid-step NB (multiple of 8 dividing B, or B itself)."""
    per_sample = T * (
        2 * C * 4                # x block (f32, double-buffered by pipeline)
        + C * 4 + C * 2          # channels-last copy + bf16 matmul copy
        + 3 * C * 4              # logits / exp / attn f32 temporaries
        + I_pad * 4 + I_pad * 2  # h (f32) + bf16 matmul copy
    )
    fixed = (2 * 4 + 2 * 2) * (2 * C * I_pad) + 2 * 4 * (I_pad + C)  # weights
    cands = sorted({nb for nb in range(8, B + 1, 8) if B % nb == 0} | {B})
    fits = [nb for nb in cands if fixed + nb * per_sample <= block_budget]
    fits = fits or cands[:1]
    nb = fits[-1]
    stepped = [c for c in fits if B // c >= min_grid_steps]
    if stepped:
        nb = stepped[-1]
    return nb


# ---------------------------------------------------------------------------
# Shared in-kernel compute blocks
# ---------------------------------------------------------------------------
def _attention_pool_block(x_blk, w1t, b1, w2t, b2, ew_dtype):
    """x_blk: (nb, C, T) f32, module's native layout -> pooled (nb, C) f32."""
    nb, c, t = x_blk.shape
    # Channels-last transpose in VMEM (XLU has slack); avoids a separate HBM
    # transpose pass over x.  T should be a multiple of 8 so the reshape below
    # stays a layout no-op.
    x = jnp.swapaxes(x_blk, 1, 2)                       # (nb, T, C)
    x2d = x.reshape(nb * t, c)                          # MXU rows = nb*T

    # conv_1 (1x1) + tanh: (nb*T, C) @ (C, I_pad), f32 accumulate.
    h = jnp.dot(x2d.astype(_MXU_DTYPE), w1t.astype(_MXU_DTYPE),
                preferred_element_type=jnp.float32) + b1
    h = jnp.tanh(h.astype(ew_dtype))                    # EUP (bf16 on v6e/v7x)

    # conv_2 (1x1): (nb*T, I_pad) @ (I_pad, C).
    logits = jnp.dot(h.astype(_MXU_DTYPE), w2t.astype(_MXU_DTYPE),
                     preferred_element_type=jnp.float32) + b2
    logits = logits.reshape(nb, t, c)

    # Softmax over T (sublane axis).  Max/sum reductions stay f32.
    logits = logits - jnp.max(logits, axis=1, keepdims=True)
    e = jnp.exp(logits.astype(ew_dtype))                              # EUP
    denom = jnp.sum(e.astype(jnp.float32), axis=1, keepdims=True)
    inv = pl.reciprocal(denom, approx=True)                           # EUP vrcp
    attn = e * inv.astype(ew_dtype)                                   # VPU

    # Attention-weighted pooling over T; accumulate in f32.
    weighted = x.astype(ew_dtype) * attn
    return jnp.sum(weighted.astype(jnp.float32), axis=1)              # (nb, C)


def _bn_fc_bn_block(pooled, g1, be1, wfc_t, bfc, g2, be2):
    """(B, C) pooled -> (B, E); training-mode BatchNorm statistics."""
    m1 = jnp.mean(pooled, axis=0, keepdims=True)
    v1 = jnp.mean((pooled - m1) ** 2, axis=0, keepdims=True)
    xn = (pooled - m1) * jax.lax.rsqrt(v1 + _BN_EPS) * g1 + be1

    # Linear (wfc_t is (C, E)); bf16 MXU operands, f32 accumulation.
    y = jnp.dot(xn.astype(_MXU_DTYPE), wfc_t.astype(_MXU_DTYPE),
                preferred_element_type=jnp.float32) + bfc

    m2 = jnp.mean(y, axis=0, keepdims=True)
    v2 = jnp.mean((y - m2) ** 2, axis=0, keepdims=True)
    return (y - m2) * jax.lax.rsqrt(v2 + _BN_EPS) * g2 + be2


# ---------------------------------------------------------------------------
# Fused path: attention pooling grid + BN->FC->BN epilogue in one pallas_call
# ---------------------------------------------------------------------------
def _fused_kernel(x_ref, w1t_ref, b1_ref, w2t_ref, b2_ref,
                  g1_ref, be1_ref, wfc_ref, bfc_ref, g2_ref, be2_ref,
                  out_ref, pooled_vmem, *, ew_dtype):
    step = pl.program_id(0)
    nb = x_ref.shape[0]

    pooled = _attention_pool_block(x_ref[...], w1t_ref[...], b1_ref[...],
                                   w2t_ref[...], b2_ref[...], ew_dtype)
    row0 = pl.multiple_of(step * nb, nb)
    pooled_vmem[pl.ds(row0, nb), :] = pooled            # persists across steps

    @pl.when(step == pl.num_programs(0) - 1)
    def _():
        out_ref[...] = _bn_fc_bn_block(
            pooled_vmem[...], g1_ref[...], be1_ref[...], wfc_ref[...],
            bfc_ref[...], g2_ref[...], be2_ref[...]).astype(out_ref.dtype)


def vsap_fused(x_nct, params, *, block_b=None):
    """Whole forward in one pallas_call; pooled rows live in a VMEM scratch."""
    (w1t, b1, w2t, b2, g1, be1, wfc_t, bfc, g2, be2) = params
    B, C, T = x_nct.shape
    w1t, b1, w2t = _pad_intermediate(w1t, b1, w2t)
    I_pad = w1t.shape[1]
    E = wfc_t.shape[1]

    block_budget, vmem_limit = _vmem_budgets()
    nb = block_b if block_b is not None else _pick_block_batch(
        B, T, C, I_pad, block_budget=block_budget, min_grid_steps=2)
    assert B % nb == 0, (B, nb)

    const = lambda shape: pl.BlockSpec(shape, lambda b: (0, 0))
    return pl.pallas_call(
        functools.partial(_fused_kernel, ew_dtype=_elementwise_dtype()),
        out_shape=jax.ShapeDtypeStruct((B, E), jnp.float32),
        grid=(B // nb,),
        in_specs=[
            pl.BlockSpec((nb, C, T), lambda b: (b, 0, 0)),   # x, native layout
            const((C, I_pad)), const((1, I_pad)),            # conv_1 (padded I)
            const((I_pad, C)), const((1, C)),                # conv_2 (padded I)
            const((1, C)), const((1, C)),                    # bn1 gamma / beta
            const((C, E)), const((1, E)),                    # fc
            const((1, E)), const((1, E)),                    # bn2 gamma / beta
        ],
        out_specs=pl.BlockSpec((B, E), lambda b: (0, 0)),    # written last step
        scratch_shapes=[pltpu.VMEM((B, C), jnp.float32)],
        compiler_params=pltpu.CompilerParams(
            dimension_semantics=("arbitrary",),   # epilogue depends on all steps
            vmem_limit_bytes=vmem_limit),
    )(x_nct, w1t, b1, w2t, b2, g1, be1, wfc_t, bfc, g2, be2)


# ---------------------------------------------------------------------------
# Split path kernel 1: attention pooling (parallel over batch blocks)
# ---------------------------------------------------------------------------
def _attn_pool_kernel(x_ref, w1t_ref, b1_ref, w2t_ref, b2_ref, out_ref, *,
                      ew_dtype):
    out_ref[...] = _attention_pool_block(
        x_ref[...], w1t_ref[...], b1_ref[...], w2t_ref[...], b2_ref[...],
        ew_dtype).astype(out_ref.dtype)


def attention_pool(x_nct, w1t, b1, w2t, b2, *, block_b=None):
    """x_nct: (B, C, T) native layout -> pooled (B, C) float32."""
    B, C, T = x_nct.shape
    w1t, b1, w2t = _pad_intermediate(w1t, b1, w2t)
    I_pad = w1t.shape[1]

    block_budget, vmem_limit = _vmem_budgets()
    nb = block_b if block_b is not None else _pick_block_batch(
        B, T, C, I_pad, block_budget=block_budget,
        min_grid_steps=_min_grid_steps_parallel())
    assert B % nb == 0, (B, nb)

    const = lambda shape: pl.BlockSpec(shape, lambda b: (0, 0))
    return pl.pallas_call(
        functools.partial(_attn_pool_kernel, ew_dtype=_elementwise_dtype()),
        out_shape=jax.ShapeDtypeStruct((B, C), jnp.float32),
        grid=(B // nb,),
        in_specs=[
            pl.BlockSpec((nb, C, T), lambda b: (b, 0, 0)),
            const((C, I_pad)), const((1, I_pad)),
            const((I_pad, C)), const((1, C)),
        ],
        out_specs=pl.BlockSpec((nb, C), lambda b: (b, 0)),
        compiler_params=pltpu.CompilerParams(
            dimension_semantics=("parallel",),
            vmem_limit_bytes=vmem_limit),
    )(x_nct, w1t, b1, w2t, b2)


# ---------------------------------------------------------------------------
# Split path kernel 2: BatchNorm1d -> Linear -> BatchNorm1d (tiny, one shot)
# ---------------------------------------------------------------------------
def _bn_fc_bn_kernel(p_ref, g1_ref, be1_ref, wfc_ref, bfc_ref, g2_ref, be2_ref,
                     out_ref):
    out_ref[...] = _bn_fc_bn_block(
        p_ref[...], g1_ref[...], be1_ref[...], wfc_ref[...], bfc_ref[...],
        g2_ref[...], be2_ref[...]).astype(out_ref.dtype)


def bn_fc_bn(pooled, g1, be1, wfc_t, bfc, g2, be2):
    B, _ = pooled.shape
    E = wfc_t.shape[1]
    _, vmem_limit = _vmem_budgets()
    vmem = lambda: pl.BlockSpec(memory_space=pltpu.MemorySpace.VMEM)
    return pl.pallas_call(
        _bn_fc_bn_kernel,
        out_shape=jax.ShapeDtypeStruct((B, E), jnp.float32),
        in_specs=[vmem() for _ in range(7)],
        out_specs=vmem(),
        compiler_params=pltpu.CompilerParams(vmem_limit_bytes=vmem_limit),
    )(pooled, g1, be1, wfc_t, bfc, g2, be2)


# ---------------------------------------------------------------------------
# Module wrapper
# ---------------------------------------------------------------------------
def _fused_fits(B, C, E):
    """Does the fused epilogue's resident state fit comfortably in VMEM?"""
    resident = 4 * (B * C + B * E + C * E + 4 * C + 3 * E)
    return resident <= _vmem_capacity_bytes() // 8


def vsap_bn_fc_bn_forward(x_nct, params, *, mode="auto", block_b=None):
    """x_nct: (B, C, T), same convention as the PyTorch module.  -> (B, E)."""
    assert x_nct.ndim == 3, "x.dim() must be 3"
    (w1t, b1, w2t, b2, g1, be1, wfc_t, bfc, g2, be2) = params
    B, C, T = x_nct.shape
    E = wfc_t.shape[1]
    if mode == "auto":
        mode = "fused" if _fused_fits(B, C, E) else "split"
    if mode == "fused":
        return vsap_fused(x_nct, params, block_b=block_b)
    pooled = attention_pool(x_nct, w1t, b1, w2t, b2, block_b=block_b)
    return bn_fc_bn(pooled, g1, be1, wfc_t, bfc, g2, be2)


# ---------------------------------------------------------------------------
# Params + pure-JAX reference
# ---------------------------------------------------------------------------
def init_params(key, channel_size, intermediate_size, embeding_size):
    C, I, E = channel_size, intermediate_size, embeding_size
    ks = jax.random.split(key, 10)
    # conv/fc weights stored pre-transposed for the channels-last kernels.
    w1t = jax.random.normal(ks[0], (C, I), jnp.float32) / jnp.sqrt(C)   # conv_1.weight^T
    b1 = 0.1 * jax.random.normal(ks[1], (1, I), jnp.float32)
    w2t = jax.random.normal(ks[2], (I, C), jnp.float32) / jnp.sqrt(I)   # conv_2.weight^T
    b2 = 0.1 * jax.random.normal(ks[3], (1, C), jnp.float32)
    g1 = 1.0 + 0.1 * jax.random.normal(ks[4], (1, C), jnp.float32)
    be1 = 0.1 * jax.random.normal(ks[5], (1, C), jnp.float32)
    wfc_t = jax.random.normal(ks[6], (C, E), jnp.float32) / jnp.sqrt(C)  # fc.weight^T
    bfc = 0.1 * jax.random.normal(ks[7], (1, E), jnp.float32)
    g2 = 1.0 + 0.1 * jax.random.normal(ks[8], (1, E), jnp.float32)
    be2 = 0.1 * jax.random.normal(ks[9], (1, E), jnp.float32)
    return (w1t, b1, w2t, b2, g1, be1, wfc_t, bfc, g2, be2)


def reference_forward(x_nct, params):
    """Pure-JAX f32 reference mirroring the PyTorch module semantics."""
    (w1t, b1, w2t, b2, g1, be1, wfc_t, bfc, g2, be2) = params
    eps = _BN_EPS
    x = jnp.swapaxes(x_nct, 1, 2)                         # (B, T, C)
    h = jnp.tanh(jnp.einsum("btc,ci->bti", x, w1t) + b1[None])
    logits = jnp.einsum("bti,ic->btc", h, w2t) + b2[None]
    attn = jax.nn.softmax(logits, axis=1)
    pooled = jnp.sum(x * attn, axis=1)                    # (B, C)
    m1 = pooled.mean(0)
    v1 = ((pooled - m1) ** 2).mean(0)
    xn = (pooled - m1) / jnp.sqrt(v1 + eps) * g1[0] + be1[0]
    y = xn @ wfc_t + bfc[0]
    m2 = y.mean(0)
    v2 = ((y - m2) ** 2).mean(0)
    return (y - m2) / jnp.sqrt(v2 + eps) * g2[0] + be2[0]


if __name__ == "__main__":
    # batch, channel_size, intermediate_size, T, embeding_size (small demo)
    B, C, I, T, E = 16, 4, 8, 16, 32

    key = jax.random.PRNGKey(0)
    k_x, k_p = jax.random.split(key)
    x = jax.random.normal(k_x, (B, C, T), jnp.float32)    # (B, C, T) like PyTorch
    params = init_params(k_p, C, I, E)

    ref = reference_forward(x, params)

    runs = {
        # auto -> fused, multi-step grid (exercises scratch accumulation + epilogue)
        "fused_auto": vsap_bn_fc_bn_forward(x, params),
        # fused, single grid step (whole batch in one block)
        "fused_1step": vsap_bn_fc_bn_forward(x, params, mode="fused", block_b=B),
        # two-kernel split path (parallel pooling grid + BN/FC/BN kernel)
        "split": vsap_bn_fc_bn_forward(x, params, mode="split"),
    }

    for name, out in runs.items():
        out = jax.block_until_ready(out)
        assert out.shape == (B, E), (name, out.shape)
        max_abs = float(jnp.max(jnp.abs(out - ref)))
        rel_l2 = float(jnp.linalg.norm(out - ref) / jnp.linalg.norm(ref))
        # Tolerance reflects bf16 MXU operands (+ bf16 tanh/exp/products on
        # v6e/v7x) and the approx reciprocal vs the f32 reference; structural
        # bugs would show O(1) errors.
        assert max_abs < 2.5e-1 and rel_l2 < 5e-2, (name, max_abs, rel_l2)

    print("KERNEL_OK")
</pallas_src>

<mosaic_0001>
module attributes {stable_mosaic.version = 11 : i64} {
  func.func @_fused_kernel(%arg0: i32, %arg1: memref<8x4x16xf32, #tpu.memory_space<vmem>>, %arg2: memref<4x128xf32, #tpu.memory_space<vmem>>, %arg3: memref<1x128xf32, #tpu.memory_space<vmem>>, %arg4: memref<128x4xf32, #tpu.memory_space<vmem>>, %arg5: memref<1x4xf32, #tpu.memory_space<vmem>>, %arg6: memref<1x4xf32, #tpu.memory_space<vmem>>, %arg7: memref<1x4xf32, #tpu.memory_space<vmem>>, %arg8: memref<4x32xf32, #tpu.memory_space<vmem>>, %arg9: memref<1x32xf32, #tpu.memory_space<vmem>>, %arg10: memref<1x32xf32, #tpu.memory_space<vmem>>, %arg11: memref<1x32xf32, #tpu.memory_space<vmem>>, %arg12: memref<16x32xf32, #tpu.memory_space<vmem>>, %arg13: memref<16x4xf32, #tpu.memory_space<vmem>>) attributes {dimension_semantics = [#tpu.dimension_semantics<arbitrary>], iteration_bounds = array<i64: 2>, scalar_prefetch = 0 : i64, scratch_operands = 1 : i64, tpu.core_type = #tpu.core_type<tc>, window_params = [{transform_indices = @transform_0, window_bounds = array<i64: 8, 4, 16>}, {pipeline_mode = #tpu.pipeline_mode<synchronous>, transform_indices = @transform_1, window_bounds = array<i64: 4, 128>}, {pipeline_mode = #tpu.pipeline_mode<synchronous>, transform_indices = @transform_2, window_bounds = array<i64: 1, 128>}, {pipeline_mode = #tpu.pipeline_mode<synchronous>, transform_indices = @transform_3, window_bounds = array<i64: 128, 4>}, {pipeline_mode = #tpu.pipeline_mode<synchronous>, transform_indices = @transform_4, window_bounds = array<i64: 1, 4>}, {pipeline_mode = #tpu.pipeline_mode<synchronous>, transform_indices = @transform_5, window_bounds = array<i64: 1, 4>}, {pipeline_mode = #tpu.pipeline_mode<synchronous>, transform_indices = @transform_6, window_bounds = array<i64: 1, 4>}, {pipeline_mode = #tpu.pipeline_mode<synchronous>, transform_indices = @transform_7, window_bounds = array<i64: 4, 32>}, {pipeline_mode = #tpu.pipeline_mode<synchronous>, transform_indices = @transform_8, window_bounds = array<i64: 1, 32>}, {pipeline_mode = #tpu.pipeline_mode<synchronous>, transform_indices = @transform_9, window_bounds = array<i64: 1, 32>}, {pipeline_mode = #tpu.pipeline_mode<synchronous>, transform_indices = @transform_10, window_bounds = array<i64: 1, 32>}, {pipeline_mode = #tpu.pipeline_mode<synchronous>, transform_indices = @transform_11, window_bounds = array<i64: 16, 32>}]} {
    %c0 = arith.constant 0 : index
    %c0_0 = arith.constant 0 : index
    %c0_1 = arith.constant 0 : index
    %0 = vector.load %arg1[%c0, %c0_0, %c0_1] : memref<8x4x16xf32, #tpu.memory_space<vmem>>, vector<8x4x16xf32>
    %c0_2 = arith.constant 0 : index
    %c0_3 = arith.constant 0 : index
    %1 = vector.load %arg2[%c0_2, %c0_3] : memref<4x128xf32, #tpu.memory_space<vmem>>, vector<4x128xf32>
    %c0_4 = arith.constant 0 : index
    %c0_5 = arith.constant 0 : index
    %2 = vector.load %arg3[%c0_4, %c0_5] : memref<1x128xf32, #tpu.memory_space<vmem>>, vector<1x128xf32>
    %c0_6 = arith.constant 0 : index
    %c0_7 = arith.constant 0 : index
    %3 = vector.load %arg4[%c0_6, %c0_7] : memref<128x4xf32, #tpu.memory_space<vmem>>, vector<128x4xf32>
    %c0_8 = arith.constant 0 : index
    %c0_9 = arith.constant 0 : index
    %4 = vector.load %arg5[%c0_8, %c0_9] : memref<1x4xf32, #tpu.memory_space<vmem>>, vector<1x4xf32>
    %5 = tpu.transpose %0, [0, 2, 1] : vector<8x4x16xf32> -> vector<8x16x4xf32>
    %6 = vector.shape_cast %5 : vector<8x16x4xf32> to vector<128x4xf32>
    %7 = arith.truncf %6 : vector<128x4xf32> to vector<128x4xbf16>
    %8 = arith.truncf %1 : vector<4x128xf32> to vector<4x128xbf16>
    %cst = arith.constant dense<0.000000e+00> : vector<128x128xf32>
    %9 = tpu.matmul %7, %8, %cst {dimension_numbers = #tpu.dot_dimension_numbers<[1], [0], [0], [1], [0, 0, 1, 1], [], []>} : vector<128x4xbf16>, vector<4x128xbf16>, vector<128x128xf32> -> vector<128x128xf32>
    %10 = vector.broadcast %2 : vector<1x128xf32> to vector<128x128xf32>
    %11 = arith.addf %9, %10 : vector<128x128xf32>
    %12 = math.tanh %11 : vector<128x128xf32>
    %13 = arith.truncf %12 : vector<128x128xf32> to vector<128x128xbf16>
    %14 = arith.truncf %3 : vector<128x4xf32> to vector<128x4xbf16>
    %cst_10 = arith.constant dense<0.000000e+00> : vector<128x4xf32>
    %15 = tpu.matmul %13, %14, %cst_10 {dimension_numbers = #tpu.dot_dimension_numbers<[1], [0], [0], [1], [0, 0, 1, 1], [], []>} : vector<128x128xbf16>, vector<128x4xbf16>, vector<128x4xf32> -> vector<128x4xf32>
    %16 = vector.broadcast %4 : vector<1x4xf32> to vector<128x4xf32>
    %17 = arith.addf %15, %16 : vector<128x4xf32>
    %18 = vector.shape_cast %17 : vector<128x4xf32> to vector<8x16x4xf32>
    %cst_11 = arith.constant dense<0xFF800000> : vector<8x4xf32>
    %19 = vector.multi_reduction <maximumf>, %18, %cst_11 [1] : vector<8x16x4xf32> to vector<8x4xf32>
    %20 = vector.shape_cast %19 : vector<8x4xf32> to vector<8x1x4xf32>
    %21 = vector.broadcast %20 : vector<8x1x4xf32> to vector<8x16x4xf32>
    %22 = arith.subf %18, %21 : vector<8x16x4xf32>
    %23 = math.exp %22 : vector<8x16x4xf32>
    %cst_12 = arith.constant dense<0.000000e+00> : vector<8x4xf32>
    %24 = vector.multi_reduction <add>, %23, %cst_12 [1] : vector<8x16x4xf32> to vector<8x4xf32>
    %25 = vector.shape_cast %24 : vector<8x4xf32> to vector<8x1x4xf32>
    %26 = tpu.reciprocal %25 {approx = true} : vector<8x1x4xf32> -> vector<8x1x4xf32>
    %27 = vector.broadcast %26 : vector<8x1x4xf32> to vector<8x16x4xf32>
    %28 = arith.mulf %23, %27 : vector<8x16x4xf32>
    %29 = arith.mulf %5, %28 : vector<8x16x4xf32>
    %cst_13 = arith.constant dense<0.000000e+00> : vector<8x4xf32>
    %30 = vector.multi_reduction <add>, %29, %cst_13 [1] : vector<8x16x4xf32> to vector<8x4xf32>
    %c8_i32 = arith.constant 8 : i32
    %31 = arith.muli %arg0, %c8_i32 : i32
    %32 = tpu.assume_multiple %31, 8 : i32
    %33 = arith.index_cast %32 : i32 to index
    %c0_14 = arith.constant 0 : index
    %34 = vector.load %arg13[%33, %c0_14] : memref<16x4xf32, #tpu.memory_space<vmem>>, vector<8x4xf32>
    tpu.vector_store %arg13[%33, %c0_14], %30 {strides = array<i32>} : memref<16x4xf32, #tpu.memory_space<vmem>>, vector<8x4xf32>,
    %c1_i32 = arith.constant 1 : i32
    %35 = arith.cmpi eq, %arg0, %c1_i32 : i32
    %36 = arith.extui %35 : i1 to i32
    %c0_i32 = arith.constant 0 : i32
    %37 = arith.cmpi ne, %36, %c0_i32 : i32
    scf.if %37 {
      %c0_15 = arith.constant 0 : index
      %c0_16 = arith.constant 0 : index
      %38 = vector.load %arg13[%c0_15, %c0_16] : memref<16x4xf32, #tpu.memory_space<vmem>>, vector<16x4xf32>
      %c0_17 = arith.constant 0 : index
      %c0_18 = arith.constant 0 : index
      %39 = vector.load %arg6[%c0_17, %c0_18] : memref<1x4xf32, #tpu.memory_space<vmem>>, vector<1x4xf32>
      %c0_19 = arith.constant 0 : index
      %c0_20 = arith.constant 0 : index
      %40 = vector.load %arg7[%c0_19, %c0_20] : memref<1x4xf32, #tpu.memory_space<vmem>>, vector<1x4xf32>
      %c0_21 = arith.constant 0 : index
      %c0_22 = arith.constant 0 : index
      %41 = vector.load %arg8[%c0_21, %c0_22] : memref<4x32xf32, #tpu.memory_space<vmem>>, vector<4x32xf32>
      %c0_23 = arith.constant 0 : index
      %c0_24 = arith.constant 0 : index
      %42 = vector.load %arg9[%c0_23, %c0_24] : memref<1x32xf32, #tpu.memory_space<vmem>>, vector<1x32xf32>
      %c0_25 = arith.constant 0 : index
      %c0_26 = arith.constant 0 : index
      %43 = vector.load %arg10[%c0_25, %c0_26] : memref<1x32xf32, #tpu.memory_space<vmem>>, vector<1x32xf32>
      %c0_27 = arith.constant 0 : index
      %c0_28 = arith.constant 0 : index
      %44 = vector.load %arg11[%c0_27, %c0_28] : memref<1x32xf32, #tpu.memory_space<vmem>>, vector<1x32xf32>
      %cst_29 = arith.constant dense<0.000000e+00> : vector<4xf32>
      %45 = vector.multi_reduction <add>, %38, %cst_29 [0] : vector<16x4xf32> to vector<4xf32>
      %46 = vector.shape_cast %45 : vector<4xf32> to vector<1x4xf32>
      %cst_30 = arith.constant 1.600000e+01 : f32
      %47 = vector.broadcast %cst_30 : f32 to vector<1x4xf32>
      %48 = arith.divf %46, %47 : vector<1x4xf32>
      %49 = vector.broadcast %48 : vector<1x4xf32> to vector<16x4xf32>
      %50 = arith.subf %38, %49 : vector<16x4xf32>
      %51 = arith.mulf %50, %50 : vector<16x4xf32>
      %cst_31 = arith.constant dense<0.000000e+00> : vector<4xf32>
      %52 = vector.multi_reduction <add>, %51, %cst_31 [0] : vector<16x4xf32> to vector<4xf32>
      %53 = vector.shape_cast %52 : vector<4xf32> to vector<1x4xf32>
      %cst_32 = arith.constant 1.600000e+01 : f32
      %54 = vector.broadcast %cst_32 : f32 to vector<1x4xf32>
      %55 = arith.divf %53, %54 : vector<1x4xf32>
      %56 = vector.broadcast %48 : vector<1x4xf32> to vector<16x4xf32>
      %57 = arith.subf %38, %56 : vector<16x4xf32>
      %cst_33 = arith.constant 9.99999974E-6 : f32
      %58 = vector.broadcast %cst_33 : f32 to vector<1x4xf32>
      %59 = arith.addf %55, %58 : vector<1x4xf32>
      %60 = math.rsqrt %59 : vector<1x4xf32>
      %61 = vector.broadcast %60 : vector<1x4xf32> to vector<16x4xf32>
      %62 = arith.mulf %57, %61 : vector<16x4xf32>
      %63 = vector.broadcast %39 : vector<1x4xf32> to vector<16x4xf32>
      %64 = arith.mulf %62, %63 : vector<16x4xf32>
      %65 = vector.broadcast %40 : vector<1x4xf32> to vector<16x4xf32>
      %66 = arith.addf %64, %65 : vector<16x4xf32>
      %67 = arith.truncf %66 : vector<16x4xf32> to vector<16x4xbf16>
      %68 = arith.truncf %41 : vector<4x32xf32> to vector<4x32xbf16>
      %cst_34 = arith.constant dense<0.000000e+00> : vector<16x32xf32>
      %69 = tpu.matmul %67, %68, %cst_34 {dimension_numbers = #tpu.dot_dimension_numbers<[1], [0], [0], [1], [0, 0, 1, 1], [], []>} : vector<16x4xbf16>, vector<4x32xbf16>, vector<16x32xf32> -> vector<16x32xf32>
      %70 = vector.broadcast %42 : vector<1x32xf32> to vector<16x32xf32>
      %71 = arith.addf %69, %70 : vector<16x32xf32>
      %cst_35 = arith.constant dense<0.000000e+00> : vector<32xf32>
      %72 = vector.multi_reduction <add>, %71, %cst_35 [0] : vector<16x32xf32> to vector<32xf32>
      %73 = vector.shape_cast %72 : vector<32xf32> to vector<1x32xf32>
      %cst_36 = arith.constant 1.600000e+01 : f32
      %74 = vector.broadcast %cst_36 : f32 to vector<1x32xf32>
      %75 = arith.divf %73, %74 : vector<1x32xf32>
      %76 = vector.broadcast %75 : vector<1x32xf32> to vector<16x32xf32>
      %77 = arith.subf %71, %76 : vector<16x32xf32>
      %78 = arith.mulf %77, %77 : vector<16x32xf32>
      %cst_37 = arith.constant dense<0.000000e+00> : vector<32xf32>
      %79 = vector.multi_reduction <add>, %78, %cst_37 [0] : vector<16x32xf32> to vector<32xf32>
      %80 = vector.shape_cast %79 : vector<32xf32> to vector<1x32xf32>
      %cst_38 = arith.constant 1.600000e+01 : f32
      %81 = vector.broadcast %cst_38 : f32 to vector<1x32xf32>
      %82 = arith.divf %80, %81 : vector<1x32xf32>
      %83 = vector.broadcast %75 : vector<1x32xf32> to vector<16x32xf32>
      %84 = arith.subf %71, %83 : vector<16x32xf32>
      %cst_39 = arith.constant 9.99999974E-6 : f32
      %85 = vector.broadcast %cst_39 : f32 to vector<1x32xf32>
      %86 = arith.addf %82, %85 : vector<1x32xf32>
      %87 = math.rsqrt %86 : vector<1x32xf32>
      %88 = vector.broadcast %87 : vector<1x32xf32> to vector<16x32xf32>
      %89 = arith.mulf %84, %88 : vector<16x32xf32>
      %90 = vector.broadcast %43 : vector<1x32xf32> to vector<16x32xf32>
      %91 = arith.mulf %89, %90 : vector<16x32xf32>
      %92 = vector.broadcast %44 : vector<1x32xf32> to vector<16x32xf32>
      %93 = arith.addf %91, %92 : vector<16x32xf32>
      %c0_40 = arith.constant 0 : index
      %c0_41 = arith.constant 0 : index
      %94 = vector.load %arg12[%c0_40, %c0_41] : memref<16x32xf32, #tpu.memory_space<vmem>>, vector<16x32xf32>
      tpu.vector_store %arg12[%c0_40, %c0_41], %93 {strides = array<i32>} : memref<16x32xf32, #tpu.memory_space<vmem>>, vector<16x32xf32>,
    } else {
    }
    return
  }
  func.func @transform_0(%arg0: i32) -> (i32, i32, i32) {
    %c0_i32 = arith.constant 0 : i32
    %c0_i32_0 = arith.constant 0 : i32
    %c0_i32_1 = arith.constant 0 : i32
    return %arg0, %c0_i32, %c0_i32_0 : i32, i32, i32
  }
  func.func @transform_1(%arg0: i32) -> (i32, i32) {
    %c0_i32 = arith.constant 0 : i32
    %c0_i32_0 = arith.constant 0 : i32
    %c0_i32_1 = arith.constant 0 : i32
    return %c0_i32, %c0_i32_0 : i32, i32
  }
  func.func @transform_2(%arg0: i32) -> (i32, i32) {
    %c0_i32 = arith.constant 0 : i32
    %c0_i32_0 = arith.constant 0 : i32
    %c0_i32_1 = arith.constant 0 : i32
    return %c0_i32, %c0_i32_0 : i32, i32
  }
  func.func @transform_3(%arg0: i32) -> (i32, i32) {
    %c0_i32 = arith.constant 0 : i32
    %c0_i32_0 = arith.constant 0 : i32
    %c0_i32_1 = arith.constant 0 : i32
    return %c0_i32, %c0_i32_0 : i32, i32
  }
  func.func @transform_4(%arg0: i32) -> (i32, i32) {
    %c0_i32 = arith.constant 0 : i32
    %c0_i32_0 = arith.constant 0 : i32
    %c0_i32_1 = arith.constant 0 : i32
    return %c0_i32, %c0_i32_0 : i32, i32
  }
  func.func @transform_5(%arg0: i32) -> (i32, i32) {
    %c0_i32 = arith.constant 0 : i32
    %c0_i32_0 = arith.constant 0 : i32
    %c0_i32_1 = arith.constant 0 : i32
    return %c0_i32, %c0_i32_0 : i32, i32
  }
  func.func @transform_6(%arg0: i32) -> (i32, i32) {
    %c0_i32 = arith.constant 0 : i32
    %c0_i32_0 = arith.constant 0 : i32
    %c0_i32_1 = arith.constant 0 : i32
    return %c0_i32, %c0_i32_0 : i32, i32
  }
  func.func @transform_7(%arg0: i32) -> (i32, i32) {
    %c0_i32 = arith.constant 0 : i32
    %c0_i32_0 = arith.constant 0 : i32
    %c0_i32_1 = arith.constant 0 : i32
    return %c0_i32, %c0_i32_0 : i32, i32
  }
  func.func @transform_8(%arg0: i32) -> (i32, i32) {
    %c0_i32 = arith.constant 0 : i32
    %c0_i32_0 = arith.constant 0 : i32
    %c0_i32_1 = arith.constant 0 : i32
    return %c0_i32, %c0_i32_0 : i32, i32
  }
  func.func @transform_9(%arg0: i32) -> (i32, i32) {
    %c0_i32 = arith.constant 0 : i32
    %c0_i32_0 = arith.constant 0 : i32
    %c0_i32_1 = arith.constant 0 : i32
    return %c0_i32, %c0_i32_0 : i32, i32
  }
  func.func @transform_10(%arg0: i32) -> (i32, i32) {
    %c0_i32 = arith.constant 0 : i32
    %c0_i32_0 = arith.constant 0 : i32
    %c0_i32_1 = arith.constant 0 : i32
    return %c0_i32, %c0_i32_0 : i32, i32
  }
  func.func @transform_11(%arg0: i32) -> (i32, i32) {
    %c0_i32 = arith.constant 0 : i32
    %c0_i32_0 = arith.constant 0 : i32
    %c0_i32_1 = arith.constant 0 : i32
    return %c0_i32, %c0_i32_0 : i32, i32
  }
}

</mosaic_0001>

<bundles_post_ra>
// kernel: tpu_custom_call.1
= control target key start
LH: loop header
LB: loop body
LE: loop exit
PB: predicated region body
PF: predicated region fallthrough
CT: control target
= control target key end

     0   :  { %16 = vsyncpa [#allocation4], 0  ;;  %s1807_s17 = smov 0   ;;  %s2186_s0 = inlined_call_operand.vmem [shape: f32[16,4,16], index: 0, kind: input, shape index: {}]   ;;  %s2187_s1 = inlined_call_operand.vmem [shape: f32[4,128], index: 1, kind: input, shape index: {}]   ;;  %s2188_s2 = inlined_call_operand.vmem [shape: f32[1,128], index: 2, kind: input, shape index: {}]   ;;  %s2189_s3 = inlined_call_operand.vmem [shape: f32[128,4], index: 3, kind: input, shape index: {}]   ;;  %s2190_s4 = inlined_call_operand.vmem [shape: f32[1,4], index: 4, kind: input, shape index: {}]   ;;  %s2191_s5 = inlined_call_operand.vmem [shape: f32[1,4], index: 5, kind: input, shape index: {}]   ;;  %s2192_s6 = inlined_call_operand.vmem [shape: f32[1,4], index: 6, kind: input, shape index: {}]   ;;  %s2193_s7 = inlined_call_operand.vmem [shape: f32[4,32], index: 7, kind: input, shape index: {}]   ;;  %s2194_s8 = inlined_call_operand.vmem [shape: f32[1,32], index: 8, kind: input, shape index: {}]   ;;  %s2195_s9 = inlined_call_operand.vmem [shape: f32[1,32], index: 9, kind: input, shape index: {}]   ;;  %s2196_s10 = inlined_call_operand.vmem [shape: f32[1,32], index: 10, kind: input, shape index: {}]   ;;  %s2197_s11 = inlined_call_operand.hbm [shape: f32[16,32], index: 11, kind: output, shape index: {}]  }
   0x1 LB: > { %s1813_s18 = sadd.s32 4294967295, %s1740_s17   ;;  %p1477_p0 = scmp.ge.s32.totalorder %s1740_s17, 1  ;;  %s1740_s17 = sphi %s1807_s17, %s22_s17  }
   0x2   : > { %p334_p1 = scmp.lt.s32.totalorder %s1740_s17, 3 }
   0x4   : > { %p335_p2 = pnand %p1477_p0, %p334_p1 }
   0x5   : > { %s1818_s19 = sshll.u32 (!%p335_p2), %s1813_s18, 3  ;;  %p1491_p4 = scmp.ne.s32.totalorder (!%p335_p2), %s1813_s18, 1 }
   0x6   : > { %338 = sbr.rel (%p335_p2) target bundleno = 1032 (0x408), region = 64  ;;  %p370_p3 = scmp.lt.s32.totalorder (!%p335_p2), %s1818_s19, 15 }
   0x7   : > { %s1263_s12 = scalar_lea.vmem (!%p335_p2), [#allocation2], %s1818_s19 }
   0xb   : > { %s371_s20 = scalar_select %p370_p3, %s1818_s19, 15  ;;  %v384_v4 = vld [vmem:[%s2187_s1] sm:$0xf]  ;;  %vm699_vm0 = vcmask 1041408   ;;  %v400_v11 = vld [vmem:[%s2189_s3 + $0x70] sm:$0xff]  ;;  %v401_v12 = vld [vmem:[%s2189_s3 + $0x78] sm:$0xff] }
   0xc   : > { %v667_v5 = vpack.c.bf16 %v384_v4, %v384_v4  ;;  %v398_v13 = vld [vmem:[%s2189_s3 + $0x60] sm:$0xff]  ;;  %v831_v14 = vpack.c.bf16 %v401_v12, %v400_v11  ;;  %v399_v15 = vld [vmem:[%s2189_s3 + $0x68] sm:$0xff]  ;;  %vm674_vm1 = vcmask 31744   ;;  %v396_v41 = vld [vmem:[%s2189_s3 + $0x50] sm:$0xff]  ;;  %vm1248_vm2 = vcmask 1041409  }
   0xd   : > { %s1479_s21 = sshll.u32 %s371_s20, 2  ;;  %v830_v16 = vpack.c.bf16 %v399_v15, %v398_v13  ;;  %v397_v42 = vld [vmem:[%s2189_s3 + $0x58] sm:$0xff]  ;;  %v394_v44 = vld [vmem:[%s2189_s3 + $0x40] sm:$0xff]  ;;  %v395_v45 = vld [vmem:[%s2189_s3 + $0x48] sm:$0xff]  ;;  %vm1250_vm3 = vcmask 1042434   ;;  %vm1252_vm4 = vcmask 1043459  }
   0xe   : > { %s373_s24 = scalar_lea.vmem %s2186_s0, %s1479_s21  ;;  %1601 = vmatprep.subr.msk.bf16.mxu0 %vm699_vm0, %v667_v5  ;;  %v701_v8 = vsel %vm699_vm0, %v667_v5, 0  ;;  %1585 = vmatprep.subr.bf16.mxu1 %v831_v14  ;;  %v829_v43 = vpack.c.bf16 %v397_v42, %v396_v41  ;;  %v828_v46 = vpack.c.bf16 %v395_v45, %v394_v44  ;;  %v392_v47 = vld [vmem:[%s2189_s3 + $0x30] sm:$0xff]  ;;  %v393_v48 = vld [vmem:[%s2189_s3 + $0x38] sm:$0xff]  ;;  %v390_v50 = vld [vmem:[%s2189_s3 + $0x20] sm:$0xff]  ;;  %vm1254_vm5 = vcmask 1044484  }
   0xf   : > { %v376_v0 = vld [vmem:[%s373_s24] sm:$0xf]  ;;  %v378_v1 = vld [vmem:[%s373_s24 + $0x8] sm:$0xf]  ;;  %v377_v2 = vld [vmem:[%s373_s24 + $0x4] sm:$0xf]  ;;  %1530 = vmatpush3.bf16.msra.mxu0 %v701_v8  ;;  %1593 = vmatpush3.bf16.msra.mxu1 %v831_v14  ;;  %v827_v49 = vpack.c.bf16 %v393_v48, %v392_v47 }
  0x10   : > { %403 = vxpose.xlu0.b32.start.end [1/1] (short) (narrow) %v376_v0, 16  ;;  %467 = vxpose.xlu1.b32.start.end [1/1] (short) (narrow) %v378_v1, 16  ;;  %v379_v3 = vld [vmem:[%s373_s24 + $0xc] sm:$0xf]  ;;  %v380_v6 = vld [vmem:[%s373_s24 + $0x10] sm:$0xf] }
  0x11   : > { %v381_v7 = vld [vmem:[%s373_s24 + $0x14] sm:$0xf]  ;;  %v382_v9 = vld [vmem:[%s373_s24 + $0x18] sm:$0xf]  ;;  %v383_v10 = vld [vmem:[%s373_s24 + $0x1c] sm:$0xf]  ;;  %1547 = vmatprep.subr.bf16.mxu0 %v831_v14  ;;  %1586 = vmatprep.subr.bf16.mxu1 %v830_v16 }
  0x12   : > { %v391_v51 = vld [vmem:[%s2189_s3 + $0x28] sm:$0xff]  ;;  %v388_v53 = vld [vmem:[%s2189_s3 + $0x10] sm:$0xff]  ;;  %v389_v54 = vld [vmem:[%s2189_s3 + $0x18] sm:$0xff]  ;;  %vm1256_vm6 = vcmask 1045509   ;;  %vm1258_vm7 = vcmask 1046534   ;;  %vm1260_vm8 = vcmask 1047559  }
  0x13   : > { %1594 = vmatpush3.bf16.msra.mxu1 %v830_v16  ;;  %v826_v52 = vpack.c.bf16 %v391_v51, %v390_v50  ;;  %v825_v55 = vpack.c.bf16 %v389_v54, %v388_v53  ;;  %v386_v56 = vld [vmem:[%s2189_s3] sm:$0xff]  ;;  %v387_v57 = vld [vmem:[%s2189_s3 + $0x8] sm:$0xff] }
  0x14   : > { %1587 = vmatprep.subr.bf16.mxu1 %v829_v43  ;;  %v824_v58 = vpack.c.bf16 %v387_v57, %v386_v56  ;;  %v1480_v60 = vld [vmem:[%s2188_s2] ss:$0 sm:$0xff] }
  0x15   : > { %435 = vxpose.xlu0.b32.start.end [1/1] (short) (narrow) %v377_v2, 16  ;;  %499 = vxpose.xlu1.b32.start.end [1/1] (short) (narrow) %v379_v3, 16 }
  0x17   : > { %1595 = vmatpush3.bf16.msra.mxu1 %v829_v43 }
  0x18   : > { %1588 = vmatprep.subr.bf16.mxu1 %v828_v46 }
  0x1a   : > { %531 = vxpose.xlu0.b32.start.end [1/1] (short) (narrow) %v380_v6, 16  ;;  %563 = vxpose.xlu1.b32.start.end [1/1] (short) (narrow) %v381_v7, 16 }
  0x1b   : > { %1596 = vmatpush3.bf16.msra.mxu1 %v828_v46 }
  0x1c   : > { %1589 = vmatprep.subr.bf16.mxu1 %v827_v49 }
  0x1f   : > { %595 = vxpose.xlu0.b32.start.end [1/1] (short) (narrow) %v382_v9, 16  ;;  %627 = vxpose.xlu1.b32.start.end [1/1] (short) (narrow) %v383_v10, 16 }
  0x20   : > { %1597 = vmatpush3.bf16.msra.mxu1 %v827_v49 }
  0x21   : > { %1590 = vmatprep.subr.bf16.mxu1 %v826_v52 }
  0x24   : > { %1598 = vmatpush3.bf16.msra.mxu1 %v826_v52 }
  0x25   : > { %1591 = vmatprep.subr.bf16.mxu1 %v825_v55 }
  0x28   : > { %1599 = vmatpush3.bf16.msra.mxu1 %v825_v55 }
  0x29   : > { %1592 = vmatprep.subr.bf16.mxu1 %v824_v58 }
  0x2c   : > { %1600 = vmatpush3.bf16.msra.mxu1 %v824_v58 }
  0x8c   : > { %v1842_v17 = vpop.trf.xlu0  ;;  %v1844_v18 = vpop.trf.xlu1 }
  0x90   : > { %v1846_v19 = vpop.trf.xlu0  ;;  %v1848_v20 = vpop.trf.xlu1 }
  0x91   : > { %v659_v21 = vpack.c.bf16 %v1846_v19, %v1842_v17  ;;  %v661_v27 = vpack.c.bf16 %v1848_v20, %v1844_v18 }
  0x93   : > { %1531 = vmatprep.mubr.msk.bf16.mxu0 %vm674_vm1, %v659_v21 }
  0x94   : > { %v1853_v22 = vpop.trf.xlu0  ;;  %v1855_v23 = vpop.trf.xlu1 }
  0x98   : > { %v1857_v24 = vpop.trf.xlu0  ;;  %v1859_v25 = vpop.trf.xlu1 }
  0x99   : > { %v660_v26 = vpack.c.bf16 %v1857_v24, %v1853_v22  ;;  %v662_v31 = vpack.c.bf16 %v1859_v25, %v1855_v23 }
  0x9b   : > { %1532 = vmatmul.mubr.msk.bf16.vlgmr.msra.gmra.mxu0 %vm674_vm1, %v660_v26 }
  0x9c   : > { %1535 = vmatprep.mubr.msk.bf16.mxu0 %vm674_vm1, %v661_v27  ;;  %v1867_v28 = vpop.trf.xlu0  ;;  %v1869_v29 = vpop.trf.xlu1  ;;  %1548 = vmatpush3.bf16.msra.mxu0 %v831_v14 }
  0x9d   : > { %1549 = vmatprep.subr.bf16.mxu0 %v830_v16 }
  0xa0   : > { %v1871_v30 = vpop.trf.xlu0  ;;  %1550 = vmatpush3.bf16.msra.mxu0 %v830_v16  ;;  %v1877_v33 = vpop.trf.xlu1 }
  0xa1   : > { %v663_v32 = vpack.c.bf16 %v1871_v30, %v1867_v28  ;;  %v664_v37 = vpack.c.bf16 %v1877_v33, %v1869_v29  ;;  %1551 = vmatprep.subr.bf16.mxu0 %v829_v43 }
  0xa3   : > { %1536 = vmatmul.mubr.msk.bf16.gmra.mxu0 %vm674_vm1, %v662_v31 }
  0xa4   : > { %1539 = vmatprep.mubr.msk.bf16.mxu0 %vm674_vm1, %v663_v32  ;;  %v1881_v34 = vpop.trf.xlu0  ;;  %v1883_v35 = vpop.trf.xlu1  ;;  %1552 = vmatpush3.bf16.msra.mxu0 %v829_v43 }
  0xa5   : > { %1553 = vmatprep.subr.bf16.mxu0 %v828_v46 }
  0xa8   : > { %v1885_v36 = vpop.trf.xlu0  ;;  %v1893_v39 = vpop.trf.xlu1  ;;  %1554 = vmatpush3.bf16.msra.mxu0 %v828_v46 }
  0xa9   : > { %v665_v38 = vpack.c.bf16 %v1885_v36, %v1881_v34  ;;  %v666_v40 = vpack.c.bf16 %v1893_v39, %v1883_v35  ;;  %1555 = vmatprep.subr.bf16.mxu0 %v827_v49 }
  0xab   : > { %1540 = vmatmul.mubr.msk.bf16.gmra.mxu0 %vm674_vm1, %v664_v37 }
  0xac   : > { %1543 = vmatprep.mubr.msk.bf16.mxu0 %vm674_vm1, %v665_v38  ;;  %1556 = vmatpush3.bf16.msra.mxu0 %v827_v49 }
  0xad   : > { %1557 = vmatprep.subr.bf16.mxu0 %v826_v52 }
  0xb0   : > { %1558 = vmatpush3.bf16.msra.mxu0 %v826_v52 }
  0xb1   : > { %1559 = vmatprep.subr.bf16.mxu0 %v825_v55 }
  0xb3   : > { %1544 = vmatmul.mubr.msk.bf16.gmra.mxu0 %vm674_vm1, %v666_v40 }
  0xb4   : > { %1560 = vmatpush3.bf16.msra.mxu0 %v825_v55 }
  0xb5   : > { %1561 = vmatprep.subr.bf16.mxu0 %v824_v58 }
  0xb8   : > { %1562 = vmatpush3.bf16.msra.mxu0 %v824_v58 }
 0x15b   : > { %v1533_v59 = vpop.f32.mrf.mxu0 }
 0x15c   : > { %v746_v1 = vadd.f32 %v1533_v59, %v1480_v60 }
 0x15d   : > { %v737_v61 = vpop.f32.mrf.mxu0 }
 0x15e   : > { %v738_v62 = vadd.f32 %v1480_v60, %v737_v61 }
 0x15f   : > { %v1534_v63 = vpop.f32.mrf.mxu0 }
 0x160   : > { %v749_v0 = vadd.f32 %v1534_v63, %v1480_v60  ;;  %1622 = vtanh.f32 %v738_v62 }
 0x161   : > { %v740_v2 = vpop.f32.mrf.mxu0 }
 0x162   : > { %v741_v3 = vadd.f32 %v1480_v60, %v740_v2  ;;  %1624 = vtanh.f32 %v749_v0 }
 0x163   : > { %v1537_v4 = vpop.f32.mrf.mxu0 }
 0x164   : > { %1626 = vtanh.f32 %v741_v3  ;;  %v762_v9 = vadd.f32 %v1537_v4, %v1480_v60 }
 0x165   : > { %1628 = vtanh.f32 %v746_v1  ;;  %v753_v5 = vpop.f32.mrf.mxu0 }
 0x166   : > { %v754_v6 = vadd.f32 %v1480_v60, %v753_v5  ;;  %v1940_v5 = vld [vmem:[%s2190_s4] ss:$0 sm:$0xff] }
 0x167   : > { %v1538_v7 = vpop.f32.mrf.mxu0 }
 0x168   : > { %v765_v8 = vadd.f32 %v1538_v7, %v1480_v60  ;;  %1630 = vtanh.f32 %v754_v6 }
 0x169   : > { %v756_v10 = vpop.f32.mrf.mxu0 }
 0x16a   : > { %v757_v11 = vadd.f32 %v1480_v60, %v756_v10  ;;  %1632 = vtanh.f32 %v765_v8 }
 0x16b   : > { %v1541_v12 = vpop.f32.mrf.mxu0 }
 0x16c   : > { %1634 = vtanh.f32 %v757_v11  ;;  %v778_v31 = vadd.f32 %v1541_v12, %v1480_v60 }
 0x16d   : > { %1636 = vtanh.f32 %v762_v9  ;;  %v769_v13 = vpop.f32.mrf.mxu0  ;;  %v1623_v15 = vpop.eup %1622 }
 0x16e   : > { %v770_v14 = vadd.f32 %v1480_v60, %v769_v13 }
 0x16f   : > { %v1542_v16 = vpop.f32.mrf.mxu0  ;;  %v1625_v21 = vpop.eup %1624 }
 0x170   : > { %v781_v26 = vadd.f32 %v1542_v16, %v1480_v60  ;;  %1638 = vtanh.f32 %v770_v14 }
 0x171   : > { %v1627_v27 = vpop.eup %1626  ;;  %v772_v32 = vpop.f32.mrf.mxu0 }
 0x172   : > { %v1629_v37 = vpop.eup %1628  ;;  %v773_v38 = vadd.f32 %v1480_v60, %v772_v32  ;;  %v816_v40 = vpack.c.bf16 %v1627_v27, %v1623_v15  ;;  %1640 = vtanh.f32 %v781_v26 }
 0x173   : > { %v1545_v41 = vpop.f32.mrf.mxu0  ;;  %v817_v42 = vpack.c.bf16 %v1625_v21, %v1629_v37 }
 0x174   : > { %1642 = vtanh.f32 %v773_v38  ;;  %1563 = vmatprep.mubr.bf16.mxu0 %v816_v40  ;;  %v794_v50 = vadd.f32 %v1545_v41, %v1480_v60 }
 0x175   : > { %1644 = vtanh.f32 %v778_v31  ;;  %v785_v43 = vpop.f32.mrf.mxu0  ;;  %1564 = vmatmul.mubr.bf16.vlgmr.msra.gmra.mxu0 %v817_v42  ;;  %v1631_v45 = vpop.eup %1630 }
 0x176   : > { %v786_v44 = vadd.f32 %v1480_v60, %v785_v43 }
 0x177   : > { %v1546_v46 = vpop.f32.mrf.mxu0  ;;  %v1633_v47 = vpop.eup %1632 }
 0x178   : > { %v797_v48 = vadd.f32 %v1546_v46, %v1480_v60  ;;  %1646 = vtanh.f32 %v786_v44 }
 0x179   : > { %v1635_v49 = vpop.eup %1634  ;;  %v788_v51 = vpop.f32.mrf.mxu0 }
 0x17a   : > { %v1637_v52 = vpop.eup %1636  ;;  %v789_v53 = vadd.f32 %v1480_v60, %v788_v51  ;;  %v818_v54 = vpack.c.bf16 %v1635_v49, %v1631_v45  ;;  %1648 = vtanh.f32 %v797_v48 }
 0x17b   : > { %v819_v55 = vpack.c.bf16 %v1633_v47, %v1637_v52 }
 0x17c   : > { %1650 = vtanh.f32 %v789_v53  ;;  %1567 = vmatprep.mubr.bf16.mxu1 %v818_v54 }
 0x17d   : > { %1652 = vtanh.f32 %v794_v50  ;;  %1568 = vmatmul.mubr.bf16.vlgmr.msra.gmra.mxu1 %v819_v55  ;;  %v1639_v56 = vpop.eup %1638 }
 0x17f   : > { %v1641_v57 = vpop.eup %1640 }
 0x181   : > { %v1643_v58 = vpop.eup %1642 }
 0x182   : > { %v1645_v59 = vpop.eup %1644  ;;  %v820_v61 = vpack.c.bf16 %v1643_v58, %v1639_v56 }
 0x183   : > { %v821_v62 = vpack.c.bf16 %v1641_v57, %v1645_v59 }
 0x184   : > { %1571 = vmatprep.mubr.bf16.mxu1 %v820_v61 }
 0x185   : > { %1572 = vmatmul.mubr.bf16.gmra.mxu1 %v821_v62  ;;  %v1647_v63 = vpop.eup %1646 }
 0x187   : > { %v1649_v0 = vpop.eup %1648 }
 0x189   : > { %v1651_v1 = vpop.eup %1650 }
 0x18a   : > { %v1653_v2 = vpop.eup %1652  ;;  %v822_v60 = vpack.c.bf16 %v1651_v1, %v1647_v63 }
 0x18b   : > { %v823_v3 = vpack.c.bf16 %v1649_v0, %v1653_v2 }
 0x18c   : > { %1575 = vmatprep.mubr.bf16.mxu1 %v822_v60 }
 0x18d   : > { %1576 = vmatmul.mubr.bf16.gmra.mxu1 %v823_v3 }
 0x235   : > { %v1565_v4 = vpop.f32.mrf.mxu0 }
 0x236   : > { %v881_v7 = vadd.f32 %v1565_v4, %v1940_v5 }
 0x237   : > { %v872_v6 = vpop.f32.mrf.mxu0 }
 0x238   : > { %v1944_v9 = vadd.f32 %v1940_v5, %v872_v6  ;;  %v944_v12 = vsel %vm674_vm1, %v881_v7, -inf }
 0x239   : > { %v1566_v8 = vpop.f32.mrf.mxu0 }
 0x23a   : > { %v884_v10 = vadd.f32 %v1566_v8, %v1940_v5  ;;  %v935_v21 = vsel %vm674_vm1, %v1944_v9, -inf }
 0x23b   : > { %v875_v11 = vpop.f32.mrf.mxu0 }
 0x23c   : > { %v945_v13 = vsel %vm674_vm1, %v884_v10, -inf  ;;  %v876_v14 = vadd.f32 %v1940_v5, %v875_v11 }
 0x23d   : > { %v946_v15 = vmax.f32 %v944_v12, %v945_v13  ;;  %v1569_v16 = vpop.f32.mrf.mxu1 }
 0x23e   : > { %v936_v26 = vsel %vm674_vm1, %v876_v14, -inf  ;;  %v1954_v37 = vadd.f32 %v1569_v16, %v1940_v5 }
 0x23f   : > { %v947_v27 = vrot.slane %v946_v15, 4  ;;  %v937_v31 = vmax.f32 %v935_v21, %v936_v26  ;;  %v888_v32 = vpop.f32.mrf.mxu1 }
 0x240   : > { %v1957_v42 = vadd.f32 %v1940_v5, %v888_v32  ;;  %v962_v47 = vsel %vm674_vm1, %v1954_v37, -inf }
 0x241   : > { %v948_v38 = vmax.f32 %v946_v15, %v947_v27  ;;  %v938_v40 = vrot.slane %v937_v31, 4  ;;  %v1570_v41 = vpop.f32.mrf.mxu1 }
 0x242   : > { %v1960_v43 = vadd.f32 %v1570_v41, %v1940_v5  ;;  %v953_v54 = vsel %vm674_vm1, %v1957_v42, -inf }
 0x243   : > { %v949_v44 = vrot.slane %v948_v38, 2  ;;  %v939_v45 = vmax.f32 %v937_v31, %v938_v40  ;;  %v891_v46 = vpop.f32.mrf.mxu1 }
 0x244   : > { %v963_v48 = vsel %vm674_vm1, %v1960_v43, -inf  ;;  %v1967_v49 = vadd.f32 %v1940_v5, %v891_v46 }
 0x245   : > { %v950_v50 = vmax.f32 %v948_v38, %v949_v44  ;;  %v940_v51 = vrot.slane %v939_v45, 2  ;;  %v964_v52 = vmax.f32 %v962_v47, %v963_v48  ;;  %v1573_v53 = vpop.f32.mrf.mxu1 }
 0x246   : > { %v954_v55 = vsel %vm674_vm1, %v1967_v49, -inf  ;;  %v1974_v56 = vadd.f32 %v1573_v53, %v1940_v5 }
 0x247   : > { %v951_v57 = vrot.slane %v950_v50, 1  ;;  %v941_v58 = vmax.f32 %v939_v45, %v940_v51  ;;  %v965_v59 = vrot.slane %v964_v52, 4  ;;  %v955_v61 = vmax.f32 %v953_v54, %v954_v55  ;;  %v904_v62 = vpop.f32.mrf.mxu1 }
 0x248   : > { %v1977_v63 = vadd.f32 %v1940_v5, %v904_v62  ;;  %v980_v4 = vsel %vm674_vm1, %v1974_v56, -inf }
 0x249   : > { %v952_v0 = vmax.f32 %v950_v50, %v951_v57  ;;  %v942_v1 = vrot.slane %v941_v58, 1  ;;  %v966_v2 = vmax.f32 %v964_v52, %v965_v59  ;;  %v956_v60 = vrot.slane %v955_v61, 4  ;;  %v1574_v3 = vpop.f32.mrf.mxu1 }
 0x24a   : > { %v1982_v6 = vadd.f32 %v1574_v3, %v1940_v5  ;;  %v971_v21 = vsel %vm674_vm1, %v1977_v63, -inf }
 0x24b   : > { %v1009_v8 = vsub.f32 %v881_v7, %v952_v0  ;;  %v1010_v11 = vsub.f32 %v884_v10, %v952_v0  ;;  %v943_v12 = vmax.f32 %v941_v58, %v942_v1  ;;  %v967_v13 = vrot.slane %v966_v2, 2  ;;  %v907_v15 = vpop.f32.mrf.mxu1 }
 0x24c   : > { %v957_v16 = vmax.f32 %v955_v61, %v956_v60  ;;  %v981_v26 = vsel %vm674_vm1, %v1982_v6, -inf  ;;  %v1989_v27 = vadd.f32 %v1940_v5, %v907_v15 }
 0x24d   : > { %v1027_v31 = vmul.f32 1.442695, %v1009_v8  ;;  %v1029_v32 = vmul.f32 1.442695, %v1010_v11  ;;  %v1007_v38 = vsub.f32 %v1944_v9, %v943_v12  ;;  %v1008_v40 = vsub.f32 %v876_v14, %v943_v12  ;;  %v1577_v7 = vpop.f32.mrf.mxu1 }
 0x24e   : > { %v968_v10 = vmax.f32 %v966_v2, %v967_v13  ;;  %v958_v41 = vrot.slane %v957_v16, 2  ;;  %v982_v44 = vmax.f32 %v980_v4, %v981_v26  ;;  %v972_v45 = vsel %vm674_vm1, %v1989_v27, -inf }
 0x24f   : > { %1654 = vpow2.f32 %v1027_v31  ;;  %v1023_v46 = vmul.f32 1.442695, %v1007_v38  ;;  %v1025_v47 = vmul.f32 1.442695, %v1008_v40  ;;  %v973_v48 = vmax.f32 %v971_v21, %v972_v45  ;;  %v920_v50 = vpop.f32.mrf.mxu1 }
 0x250   : > { %1656 = vpow2.f32 %v1029_v32  ;;  %v969_v51 = vrot.slane %v968_v10, 1  ;;  %v959_v52 = vmax.f32 %v957_v16, %v958_v41  ;;  %v983_v53 = vrot.slane %v982_v44, 4 }
 0x251   : > { %1658 = vpow2.f32 %v1023_v46  ;;  %v974_v54 = vrot.slane %v973_v48, 4  ;;  %v1995_v9 = vadd.f32 %v1577_v7, %v1940_v5  ;;  %v1998_v14 = vadd.f32 %v1940_v5, %v920_v50  ;;  %v1578_v55 = vpop.f32.mrf.mxu1 }
 0x252   : > { %1660 = vpow2.f32 %v1025_v47  ;;  %v970_v57 = vmax.f32 %v968_v10, %v969_v51  ;;  %v960_v58 = vrot.slane %v959_v52, 1  ;;  %v984_v59 = vmax.f32 %v982_v44, %v983_v53 }
 0x253   : > { %v975_v61 = vmax.f32 %v973_v48, %v974_v54  ;;  %v998_v62 = vsel %vm674_vm1, %v1995_v9, -inf  ;;  %v2003_v0 = vadd.f32 %v1578_v55, %v1940_v5  ;;  %v923_v1 = vpop.f32.mrf.mxu1  ;;  %v989_v11 = vsel %vm674_vm1, %v1998_v14, -inf }
 0x254   : > { %v1013_v2 = vsub.f32 %v1954_v37, %v970_v57  ;;  %v1014_v60 = vsub.f32 %v1960_v43, %v970_v57  ;;  %v961_v3 = vmax.f32 %v959_v52, %v960_v58  ;;  %v985_v4 = vrot.slane %v984_v59, 2 }
 0x255   : > { %v976_v8 = vrot.slane %v975_v61, 2  ;;  %v999_v12 = vsel %vm674_vm1, %v2003_v0, -inf  ;;  %v2012_v13 = vadd.f32 %v1940_v5, %v923_v1 }
 0x256   : > { %v1035_v15 = vmul.f32 1.442695, %v1013_v2  ;;  %v1037_v16 = vmul.f32 1.442695, %v1014_v60  ;;  %v1011_v21 = vsub.f32 %v1957_v42, %v961_v3  ;;  %v1012_v37 = vsub.f32 %v1967_v49, %v961_v3 }
 0x257   : > { %v986_v26 = vmax.f32 %v984_v59, %v985_v4  ;;  %v977_v43 = vmax.f32 %v975_v61, %v976_v8  ;;  %v1000_v31 = vmax.f32 %v998_v62, %v999_v12  ;;  %v990_v32 = vsel %vm674_vm1, %v2012_v13, -inf }
 0x258   : > { %1662 = vpow2.f32 %v1035_v15  ;;  %v1031_v38 = vmul.f32 1.442695, %v1011_v21  ;;  %v1033_v40 = vmul.f32 1.442695, %v1012_v37  ;;  %v991_v7 = vmax.f32 %v989_v11, %v990_v32 }
 0x259   : > { %1664 = vpow2.f32 %v1037_v16  ;;  %v987_v10 = vrot.slane %v986_v26, 1  ;;  %v978_v5 = vrot.slane %v977_v43, 1  ;;  %v1001_v41 = vrot.slane %v1000_v31, 4 }
 0x25a   : > { %1666 = vpow2.f32 %v1031_v38  ;;  %v992_v44 = vrot.slane %v991_v7, 4 }
 0x25b   : > { %1668 = vpow2.f32 %v1033_v40  ;;  %v988_v42 = vmax.f32 %v986_v26, %v987_v10  ;;  %v979_v45 = vmax.f32 %v977_v43, %v978_v5  ;;  %v1002_v49 = vmax.f32 %v1000_v31, %v1001_v41 }
 0x25c   : > { %v2018_v46 = vpop.eup %1654  ;;  %v993_v47 = vmax.f32 %v991_v7, %v992_v44 }
 0x25d   : > { %v2020_v48 = vpop.eup %1656  ;;  %v1064_v50 = vsel %vm674_vm1, %v2018_v46, 0.0  ;;  %v1017_v51 = vsub.f32 %v1974_v56, %v988_v42  ;;  %v1018_v52 = vsub.f32 %v1982_v6, %v988_v42  ;;  %v1015_v53 = vsub.f32 %v1977_v63, %v979_v45 }
 0x25e   : > { %v2027_v54 = vpop.eup %1658  ;;  %v1065_v55 = vsel %vm674_vm1, %v2020_v48, 0.0  ;;  %v1016_v57 = vsub.f32 %v1989_v27, %v979_v45  ;;  %v1003_v58 = vrot.slane %v1002_v49, 2  ;;  %v994_v59 = vrot.slane %v993_v47, 2 }
 0x25f   : > { %v2032_v61 = vpop.eup %1660  ;;  %v1066_v62 = vadd.f32 %v1065_v55, %v1064_v50  ;;  %v1055_v1 = vsel %vm674_vm1, %v2027_v54, 0.0  ;;  %v1043_v56 = vmul.f32 1.442695, %v1017_v51  ;;  %v1045_v2 = vmul.f32 1.442695, %v1018_v52 }
 0x260   : > { %v1056_v63 = vsel %vm674_vm1, %v2032_v61, 0.0  ;;  %v1039_v6 = vmul.f32 1.442695, %v1015_v53  ;;  %v1041_v60 = vmul.f32 1.442695, %v1016_v57  ;;  %v1004_v3 = vmax.f32 %v1002_v49, %v1003_v58 }
 0x261   : > { %v1067_v4 = vrot.slane %v1066_v62, 4  ;;  %v1057_v8 = vadd.f32 %v1056_v63, %v1055_v1  ;;  %1670 = vpow2.f32 %v1043_v56  ;;  %v995_v27 = vmax.f32 %v993_v47, %v994_v59 }
 0x262   : > { %1672 = vpow2.f32 %v1045_v2  ;;  %v1005_v11 = vrot.slane %v1004_v3, 1 }
 0x263   : > { %v1068_v12 = vadd.f32 %v1067_v4, %v1066_v62  ;;  %v1058_v15 = vrot.slane %v1057_v8, 4  ;;  %1674 = vpow2.f32 %v1039_v6  ;;  %v996_v16 = vrot.slane %v995_v27, 1 }
 0x264   : > { %1676 = vpow2.f32 %v1041_v60  ;;  %v1006_v21 = vmax.f32 %v1004_v3, %v1005_v11 }
 0x265   : > { %v2038_v37 = vpop.eup %1662  ;;  %v1069_v26 = vrot.slane %v1068_v12, 2  ;;  %v1059_v43 = vadd.f32 %v1058_v15, %v1057_v8  ;;  %v997_v31 = vmax.f32 %v995_v27, %v996_v16 }
 0x266   : > { %v2040_v32 = vpop.eup %1664  ;;  %v1082_v38 = vsel %vm674_vm1, %v2038_v37, 0.0  ;;  %v1021_v40 = vsub.f32 %v1995_v9, %v1006_v21  ;;  %v1022_v7 = vsub.f32 %v2003_v0, %v1006_v21 }
 0x267   : > { %v2046_v10 = vpop.eup %1666  ;;  %v1070_v5 = vadd.f32 %v1069_v26, %v1068_v12  ;;  %v1060_v41 = vrot.slane %v1059_v43, 2  ;;  %v1083_v44 = vsel %vm674_vm1, %v2040_v32, 0.0  ;;  %v1019_v42 = vsub.f32 %v1998_v14, %v997_v31 }
 0x268   : > { %v2051_v45 = vpop.eup %1668  ;;  %v1084_v49 = vadd.f32 %v1083_v44, %v1082_v38  ;;  %v1073_v47 = vsel %vm674_vm1, %v2046_v10, 0.0  ;;  %v1051_v50 = vmul.f32 1.442695, %v1021_v40  ;;  %v1053_v51 = vmul.f32 1.442695, %v1022_v7 }
 0x269   : > { %v1071_v9 = vrot.slane %v1070_v5, 1  ;;  %v1061_v52 = vadd.f32 %v1060_v41, %v1059_v43  ;;  %v1074_v0 = vsel %vm674_vm1, %v2051_v45, 0.0  ;;  %v1020_v53 = vsub.f32 %v2012_v13, %v997_v31 }
 0x26a   : > { %v1085_v55 = vrot.slane %v1084_v49, 4  ;;  %v1075_v57 = vadd.f32 %v1074_v0, %v1073_v47  ;;  %1678 = vpow2.f32 %v1051_v50  ;;  %v1047_v58 = vmul.f32 1.442695, %v1019_v42 }
 0x26b   : > { %v1072_v14 = vadd.f32 %v1071_v9, %v1070_v5  ;;  %v1062_v59 = vrot.slane %v1061_v52, 1  ;;  %1680 = vpow2.f32 %v1053_v51  ;;  %v1049_v62 = vmul.f32 1.442695, %v1020_v53 }
 0x26c   : > { %v1086_v1 = vadd.f32 %v1085_v55, %v1084_v49  ;;  %v1076_v56 = vrot.slane %v1075_v57, 4  ;;  %1682 = vpow2.f32 %v1047_v58 }
 0x26d   : > { %1684 = vrcp.f32 %v1072_v14  ;;  %v1063_v2 = vadd.f32 %v1062_v59, %v1061_v52 }
 0x26e   : > { %v2058_v63 = vpop.eup %1670  ;;  %v1087_v6 = vrot.slane %v1086_v1, 2  ;;  %v1077_v60 = vadd.f32 %v1076_v56, %v1075_v57  ;;  %1686 = vpow2.f32 %v1049_v62 }
 0x26f   : > { %v2060_v3 = vpop.eup %1672  ;;  %1688 = vrcp.f32 %v1063_v2  ;;  %v1100_v13 = vsel %vm674_vm1, %v2058_v63, 0.0 }
 0x270   : > { %v2064_v4 = vpop.eup %1674  ;;  %v1088_v8 = vadd.f32 %v1087_v6, %v1086_v1  ;;  %v1078_v27 = vrot.slane %v1077_v60, 2  ;;  %v1101_v11 = vsel %vm674_vm1, %v2060_v3, 0.0 }
 0x271   : > { %v2068_v12 = vpop.eup %1676  ;;  %v1102_v15 = vadd.f32 %v1101_v11, %v1100_v13  ;;  %v1091_v16 = vsel %vm674_vm1, %v2064_v4, 0.0 }
 0x272   : > { %v1089_v21 = vrot.slane %v1088_v8, 1  ;;  %v1079_v26 = vadd.f32 %v1078_v27, %v1077_v60  ;;  %v1092_v43 = vsel %vm674_vm1, %v2068_v12, 0.0 }
 0x273   : > { %v1103_v31 = vrot.slane %v1102_v15, 4  ;;  %v1093_v38 = vadd.f32 %v1092_v43, %v1091_v16 }
 0x274   : > { %v1090_v40 = vadd.f32 %v1089_v21, %v1088_v8  ;;  %v1080_v7 = vrot.slane %v1079_v26, 1 }
 0x275   : > { %v1104_v5 = vadd.f32 %v1103_v31, %v1102_v15  ;;  %v1094_v41 = vrot.slane %v1093_v38, 4 }
 0x276   : > { %1690 = vrcp.f32 %v1090_v40  ;;  %v1081_v44 = vadd.f32 %v1080_v7, %v1079_v26 }
 0x277   : > { %v2074_v42 = vpop.eup %1678  ;;  %v1105_v49 = vrot.slane %v1104_v5, 2  ;;  %v1095_v47 = vadd.f32 %v1094_v41, %v1093_v38 }
 0x278   : > { %v2076_v50 = vpop.eup %1680  ;;  %1692 = vrcp.f32 %v1081_v44  ;;  %v1118_v51 = vsel %vm674_vm1, %v2074_v42, 0.0 }
 0x279   : > { %v2080_v9 = vpop.eup %1682  ;;  %v1106_v52 = vadd.f32 %v1105_v49, %v1104_v5  ;;  %v1096_v0 = vrot.slane %v1095_v47, 2  ;;  %v1119_v53 = vsel %vm674_vm1, %v2076_v50, 0.0 }
 0x27a   : > { %v1685_v55 = vpop.eup %1684  ;;  %v1120_v57 = vadd.f32 %v1119_v53, %v1118_v51  ;;  %v1109_v62 = vsel %vm674_vm1, %v2080_v9, 0.0 }
 0x27b   : > { %v2084_v58 = vpop.eup %1686  ;;  %v1107_v14 = vrot.slane %v1106_v52, 1  ;;  %v1097_v59 = vadd.f32 %v1096_v0, %v1095_v47  ;;  %v1137_v27 = vmul.f32 %v1685_v55, %v2018_v46  ;;  %v1138_v26 = vmul.f32 %v1685_v55, %v2020_v48 }
 0x27c   : > { %v1689_v1 = vpop.eup %1688  ;;  %v1121_v56 = vrot.slane %v1120_v57, 4  ;;  %v1110_v2 = vsel %vm674_vm1, %v2084_v58, 0.0 }
 0x27d   : > { %v1108_v6 = vadd.f32 %v1107_v14, %v1106_v52  ;;  %v1098_v60 = vrot.slane %v1097_v59, 1  ;;  %v1111_v8 = vadd.f32 %v1110_v2, %v1109_v62  ;;  %v1135_v11 = vmul.f32 %v1689_v1, %v2027_v54 }
 0x27e   : > { %v1122_v13 = vadd.f32 %v1121_v56, %v1120_v57  ;;  %v1136_v15 = vmul.f32 %v1689_v1, %v2032_v61  ;;  %v1153_v7 = vmul.f32 %v1137_v27, %v1853_v22  ;;  %v1154_v54 = vmul.f32 %v1138_v26, %v1857_v24 }
 0x27f   : > { %1694 = vrcp.f32 %v1108_v6  ;;  %v1099_v16 = vadd.f32 %v1098_v60, %v1097_v59  ;;  %v1112_v43 = vrot.slane %v1111_v8, 4  ;;  %v1151_v5 = vmul.f32 %v1135_v11, %v1842_v17 }
 0x280   : > { %v1123_v21 = vrot.slane %v1122_v13, 2  ;;  %v1152_v46 = vmul.f32 %v1136_v15, %v1846_v19  ;;  %v1176_v22 = vsel %vm674_vm1, %v1153_v7, 0.0  ;;  %v1177_v24 = vsel %vm674_vm1, %v1154_v54, 0.0 }
 0x281   : > { %1696 = vrcp.f32 %v1099_v16  ;;  %v1113_v40 = vadd.f32 %v1112_v43, %v1111_v8  ;;  %v1167_v17 = vsel %vm674_vm1, %v1151_v5, 0.0  ;;  %v1178_v59 = vadd.f32 %v1177_v24, %v1176_v22 }
 0x282   : > { %v1124_v31 = vadd.f32 %v1123_v21, %v1122_v13  ;;  %v1168_v19 = vsel %vm674_vm1, %v1152_v46, 0.0 }
 0x283   : > { %v1691_v38 = vpop.eup %1690  ;;  %v1114_v44 = vrot.slane %v1113_v40, 2  ;;  %v1169_v55 = vadd.f32 %v1168_v19, %v1167_v17  ;;  %v1179_v60 = vrot.slane %v1178_v59, 4 }
 0x284   : > { %v1125_v61 = vrot.slane %v1124_v31, 1  ;;  %v1141_v49 = vmul.f32 %v1691_v38, %v2038_v37  ;;  %v1142_v48 = vmul.f32 %v1691_v38, %v2040_v32 }
 0x285   : > { %v1693_v41 = vpop.eup %1692  ;;  %v1115_v0 = vadd.f32 %v1114_v44, %v1113_v40 }
 0x286   : > { %v1139_v47 = vmul.f32 %v1693_v41, %v2046_v10  ;;  %v1140_v51 = vmul.f32 %v1693_v41, %v2051_v45  ;;  %v1126_v52 = vadd.f32 %v1125_v61, %v1124_v31  ;;  %v1157_v32 = vmul.f32 %v1141_v49, %v1855_v23 }
 0x287   : > { %v1158_v10 = vmul.f32 %v1142_v48, %v1859_v25  ;;  %v1116_v45 = vrot.slane %v1115_v0, 1  ;;  %v1170_v25 = vrot.slane %v1169_v55, 4  ;;  %v1180_v31 = vadd.f32 %v1179_v60, %v1178_v59 }
 0x288   : > { %v1155_v53 = vmul.f32 %v1139_v47, %v1844_v18  ;;  %v1156_v37 = vmul.f32 %v1140_v51, %v1848_v20  ;;  %1698 = vrcp.f32 %v1126_v52  ;;  %v1194_v2 = vsel %vm674_vm1, %v1157_v32, 0.0 }
 0x289   : > { %v1117_v1 = vadd.f32 %v1116_v45, %v1115_v0  ;;  %v1195_v18 = vsel %vm674_vm1, %v1158_v10, 0.0  ;;  %v1171_v26 = vadd.f32 %v1170_v25, %v1169_v55  ;;  %v1181_v54 = vrot.slane %v1180_v31, 2 }
 0x28a   : > { %v1185_v57 = vsel %vm674_vm1, %v1155_v53, 0.0  ;;  %v1186_v14 = vsel %vm674_vm1, %v1156_v37, 0.0  ;;  %v1196_v11 = vadd.f32 %v1195_v18, %v1194_v2 }
 0x28b   : > { %v1187_v62 = vadd.f32 %v1186_v14, %v1185_v57  ;;  %1700 = vrcp.f32 %v1117_v1  ;;  %v1182_v17 = vadd.f32 %v1181_v54, %v1180_v31 }
 0x28c   : > { %v1695_v56 = vpop.eup %1694  ;;  %v1197_v40 = vrot.slane %v1196_v11, 4 }
 0x28d   : > { %v1145_v20 = vmul.f32 %v1695_v56, %v2058_v63  ;;  %v1146_v23 = vmul.f32 %v1695_v56, %v2060_v3  ;;  %v1188_v13 = vrot.slane %v1187_v62, 4  ;;  %v1183_v55 = vrot.slane %v1182_v17, 1 }
 0x28e   : > { %v1697_v6 = vpop.eup %1696  ;;  %v1198_v44 = vadd.f32 %v1197_v40, %v1196_v11 }
 0x28f   : > { %v1161_v8 = vmul.f32 %v1145_v20, %v1869_v29  ;;  %v1162_v27 = vmul.f32 %v1146_v23, %v1877_v33  ;;  %v1143_v15 = vmul.f32 %v1697_v6, %v2064_v4  ;;  %v1144_v16 = vmul.f32 %v1697_v6, %v2068_v12 }
 0x290   : > { %v1189_v38 = vadd.f32 %v1188_v13, %v1187_v62  ;;  %v1172_v12 = vrot.slane %v1171_v26, 2  ;;  %v1199_v24 = vrot.slane %v1198_v44, 2 }
 0x291   : > { %v1212_v21 = vsel %vm674_vm1, %v1161_v8, 0.0  ;;  %v1213_v63 = vsel %vm674_vm1, %v1162_v27, 0.0  ;;  %v1159_v3 = vmul.f32 %v1143_v15, %v1867_v28  ;;  %v1160_v43 = vmul.f32 %v1144_v16, %v1871_v30 }
 0x292   : > { %v1214_v29 = vadd.f32 %v1213_v63, %v1212_v21  ;;  %v1190_v61 = vrot.slane %v1189_v38, 2  ;;  %v1173_v51 = vadd.f32 %v1172_v12, %v1171_v26  ;;  %v1200_v62 = vadd.f32 %v1199_v24, %v1198_v44 }
 0x293   : > { %v1203_v33 = vsel %vm674_vm1, %v1159_v3, 0.0  ;;  %v1204_v7 = vsel %vm674_vm1, %v1160_v43, 0.0 }
 0x294   : > { %v1205_v5 = vadd.f32 %v1204_v7, %v1203_v33  ;;  %v1215_v30 = vrot.slane %v1214_v29, 4  ;;  %v1174_v10 = vrot.slane %v1173_v51, 1  ;;  %v1201_v25 = vrot.slane %v1200_v62, 1 }
 0x295   : > { %v1699_v4 = vpop.eup %1698 }
 0x296   : > { %v1149_v46 = vmul.f32 %v1699_v4, %v2074_v42  ;;  %v1150_v41 = vmul.f32 %v1699_v4, %v2076_v50  ;;  %v1206_v28 = vrot.slane %v1205_v5, 4  ;;  %v1191_v42 = vadd.f32 %v1190_v61, %v1189_v38 }
 0x297   : > { %v1216_v53 = vadd.f32 %v1215_v30, %v1214_v29  ;;  %v1202_v16 = vadd.f32 %v1201_v25, %v1200_v62 }
 0x298   : > { %v1165_v49 = vmul.f32 %v1149_v46, %v1883_v35  ;;  %v1166_v48 = vmul.f32 %v1150_v41, %v1893_v39  ;;  %v1207_v47 = vadd.f32 %v1206_v28, %v1205_v5  ;;  %v1701_v22 = vpop.eup %1700  ;;  %v1192_v57 = vrot.slane %v1191_v42, 1 }
 0x299   : > { %v1147_v37 = vmul.f32 %v1701_v22, %v2080_v9  ;;  %v1148_v32 = vmul.f32 %v1701_v22, %v2084_v58  ;;  %v1217_v1 = vrot.slane %v1216_v53, 2  ;;  %v1175_v9 = vadd.f32 %v1174_v10, %v1173_v51 }
 0x29a   : > { %v1230_v52 = vsel %vm674_vm1, %v1165_v49, 0.0  ;;  %v1231_v0 = vsel %vm674_vm1, %v1166_v48, 0.0  ;;  %v1208_v19 = vrot.slane %v1207_v47, 2  ;;  %v1193_v58 = vadd.f32 %v1192_v57, %v1191_v42 }
 0x29b   : > { %v1232_v50 = vadd.f32 %v1231_v0, %v1230_v52  ;;  %v1163_v39 = vmul.f32 %v1147_v37, %v1881_v34  ;;  %v1164_v45 = vmul.f32 %v1148_v32, %v1885_v36  ;;  %v1184_v34 = vadd.f32 %v1183_v55, %v1182_v17 }
 0x29c   : > { %v1209_v14 = vadd.f32 %v1208_v19, %v1207_v47  ;;  %v1218_v36 = vadd.f32 %v1217_v1, %v1216_v53 }
 0x29d   : > { %v1233_v35 = vrot.slane %v1232_v50, 4  ;;  %v1221_v56 = vsel %vm674_vm1, %v1163_v39, 0.0  ;;  %v1222_v2 = vsel %vm674_vm1, %v1164_v45, 0.0  ;;  %v1249_v13 = vsel %vm1248_vm2, %v1184_v34, %v1175_v9 }
 0x29e   : > { %v1223_v18 = vadd.f32 %v1222_v2, %v1221_v56  ;;  %v1210_v23 = vrot.slane %v1209_v14, 1  ;;  %v1251_v27 = vsel %vm1250_vm3, %v1193_v58, %v1249_v13  ;;  %v1219_v21 = vrot.slane %v1218_v36, 1 }
 0x29f   : > { %v1234_v59 = vadd.f32 %v1233_v35, %v1232_v50  ;;  %v1253_v26 = vsel %vm1252_vm4, %v1202_v16, %v1251_v27 }
 0x2a0   : > { %v1224_v6 = vrot.slane %v1223_v18, 4  ;;  %v1211_v11 = vadd.f32 %v1210_v23, %v1209_v14  ;;  %v1220_v38 = vadd.f32 %v1219_v21, %v1218_v36 }
 0x2a1   : > { %v1235_v20 = vrot.slane %v1234_v59, 2 }
 0x2a2   : > { %v1225_v60 = vadd.f32 %v1224_v6, %v1223_v18  ;;  %v1255_v43 = vsel %vm1254_vm5, %v1211_v11, %v1253_v26 }
 0x2a3   : > { %v1236_v8 = vadd.f32 %v1235_v20, %v1234_v59  ;;  %v1257_v33 = vsel %vm1256_vm6, %v1220_v38, %v1255_v43 }
 0x2a4   : > { %v1226_v15 = vrot.slane %v1225_v60, 2 }
 0x2a5   : > { %v1237_v3 = vrot.slane %v1236_v8, 1 }
 0x2a6   : > { %v1227_v63 = vadd.f32 %v1226_v15, %v1225_v60 }
 0x2a7   : > { %v1238_v29 = vadd.f32 %v1237_v3, %v1236_v8 }
 0x2a8   : > { %v1228_v31 = vrot.slane %v1227_v63, 1 }
 0x2aa   : > { %v1229_v40 = vadd.f32 %v1228_v31, %v1227_v63  ;;  %1268 = sbr.rel (%p1491_p4) target bundleno = 1016 (0x3f8), region = 68 }
 0x2ac   : > { %v1259_v7 = vsel %vm1258_vm7, %v1229_v40, %v1257_v33 }
 0x2ad   : > { %v1261_v4 = vsel %vm1260_vm8, %v1238_v29, %v1259_v7 }
 0x2ae   : > { %1264 = vst.msk [vmem:[%s1263_s12] sm:$0xff] %vm674_vm1, %v1261_v4 }
 0x2af   : > { %v1273_v5 = vld [vmem:[%s2193_s7] sm:$0xf]  ;;  %v1742_v41 = vmov 0.0   ;;  %vm1743_vm9 = vmmov 0   ;;  %vm1377_vm10 = vcmask 261120  }
 0x2b0   : > { %1579 = vmatprep.subr.bf16.mxu0 %v1742_v41  ;;  %v1323_v54 = vpack.c.bf16 %v1273_v5, %v1273_v5  ;;  %1581 = vmatprep.mubr.msk.bf16.mxu0 %vm1743_vm9, %v1742_v41  ;;  %v1492_v62 = vld [vmem:[%s2191_s5] ss:$0 sm:$0xff] }
 0x2b1   : > { %v1493_v2 = vld [vmem:[%s2192_s6] ss:$0 sm:$0xff] }
 0x2b2   : > { %v1334_v30 = vsel %vm699_vm0, %v1323_v54, 0  ;;  %v1494_v6 = vld [vmem:[%s2194_s8] ss:$0 sm:$0xff] }
 0x2b3   : > { %1580 = vmatpush3.bf16.msra.mxu0 %v1334_v30 }
 0x2b5   : > { %v1269_v12 = vld [vmem:[#allocation2] sm:$0xff]  ;;  %v1270_v46 = vld [vmem:[#allocation2 + $0x8] sm:$0xff] }
 0x2b6   : > { %v1277_v61 = vsel %vm674_vm1, %v1269_v12, 0.0  ;;  %v1278_v28 = vsel %vm674_vm1, %v1270_v46, 0.0 }
 0x2b7   : > { %v1279_v44 = vadd.f32 %v1278_v28, %v1277_v61 }
 0x2b9   : > { %v1280_v49 = vrot.slane %v1279_v44, 4 }
 0x2bb   : > { %v1281_v48 = vadd.f32 %v1280_v49, %v1279_v44 }
 0x2bd   : > { %v1282_v47 = vrot.slane %v1281_v48, 2 }
 0x2bf   : > { %v1283_v51 = vadd.f32 %v1282_v47, %v1281_v48  ;;  %v1496_v48 = vld [vmem:[%s2195_s9] ss:$0 sm:$0xff] }
 0x2c1   : > { %v1284_v52 = vrot.slane %v1283_v51, 1 }
 0x2c3   : > { %v1285_v0 = vadd.f32 %v1284_v52, %v1283_v51  ;;  %v1497_v52 = vld [vmem:[%s2196_s10] ss:$0 sm:$0xff] }
 0x2c5   : > { %v1287_v22 = vmul.f32 0.0625, %v1285_v0 }
 0x2c7   : > { %v1288_v17 = vsub.f32 %v1269_v12, %v1287_v22  ;;  %v1289_v42 = vsub.f32 %v1270_v46, %v1287_v22 }
 0x2c9   : > { %v1290_v19 = vmul.f32 %v1288_v17, %v1288_v17  ;;  %v1291_v50 = vmul.f32 %v1289_v42, %v1289_v42 }
 0x2cb   : > { %v1292_v24 = vsel %vm674_vm1, %v1290_v19, 0.0  ;;  %v1293_v53 = vsel %vm674_vm1, %v1291_v50, 0.0 }
 0x2cc   : > { %v1294_v37 = vadd.f32 %v1293_v53, %v1292_v24 }
 0x2ce   : > { %v1295_v32 = vrot.slane %v1294_v37, 4 }
 0x2d0   : > { %v1296_v35 = vadd.f32 %v1295_v32, %v1294_v37 }
 0x2d2   : > { %v1297_v10 = vrot.slane %v1296_v35, 2 }
 0x2d4   : > { %v1298_v39 = vadd.f32 %v1297_v10, %v1296_v35 }
 0x2d6   : > { %v1299_v45 = vrot.slane %v1298_v39, 1 }
 0x2d8   : > { %v1300_v55 = vadd.f32 %v1299_v45, %v1298_v39 }
 0x2da   : > { %v1301_v57 = vmul.f32 0.0625, %v1300_v55 }
 0x2dc   : > { %v1302_v14 = vadd.f32 1e-05, %v1301_v57 }
 0x2de   : > { %1702 = vrsqrt.f32 %v1302_v14 }
 0x2eb   : > { %v1703_v59 = vpop.eup %1702 }
 0x2ec   : > { %v1304_v1 = vmul.f32 %v1703_v59, %v1288_v17  ;;  %v1305_v56 = vmul.f32 %v1703_v59, %v1289_v42 }
 0x2ee   : > { %v1312_v18 = vmul.f32 %v1492_v62, %v1304_v1  ;;  %v1313_v9 = vmul.f32 %v1492_v62, %v1305_v56 }
 0x2f0   : > { %v1320_v20 = vadd.f32 %v1493_v2, %v1312_v18  ;;  %v1321_v58 = vadd.f32 %v1493_v2, %v1313_v9 }
 0x2f2   : > { %v1322_v23 = vpack.c.bf16 %v1321_v58, %v1320_v20 }
 0x2f4   : > { %1582 = vmatmul.mubr.msk.bf16.vlgmr.msra.gmra.mxu0 %vm674_vm1, %v1322_v23 }
 0x3b4   : > { %v1370_v34 = vpop.f32.mrf.mxu0 }
 0x3b5   : > { %v1371_v36 = vadd.f32 %v1494_v6, %v1370_v34 }
 0x3b6   : > { %v1583_v25 = vpop.f32.mrf.mxu0 }
 0x3b7   : > { %v1378_v27 = vsel %vm1377_vm10, %v1371_v36, 0.0 }
 0x3b8   : > { %v1373_v60 = vpop.f32.mrf.mxu0 }
 0x3b9   : > { %v1374_v13 = vadd.f32 %v1494_v6, %v1373_v60 }
 0x3ba   : > { %v1584_v8 = vpop.f32.mrf.mxu0 }
 0x3bb   : > { %v1379_v11 = vsel %vm1377_vm10, %v1374_v13, 0.0 }
 0x3bc   : > { %v1380_v15 = vadd.f32 %v1379_v11, %v1378_v27 }
 0x3be   : > { %v1381_v16 = vrot.slane %v1380_v15, 4 }
 0x3c0   : > { %v1382_v21 = vadd.f32 %v1381_v16, %v1380_v15 }
 0x3c2   : > { %v1383_v63 = vrot.slane %v1382_v21, 2 }
 0x3c4   : > { %v1384_v26 = vadd.f32 %v1383_v63, %v1382_v21 }
 0x3c6   : > { %v1385_v3 = vrot.slane %v1384_v26, 1 }
 0x3c8   : > { %v1386_v43 = vadd.f32 %v1385_v3, %v1384_v26 }
 0x3ca   : > { %v1387_v31 = vmul.f32 0.0625, %v1386_v43 }
 0x3cc   : > { %v1388_v38 = vsub.f32 %v1371_v36, %v1387_v31  ;;  %v1389_v40 = vsub.f32 %v1374_v13, %v1387_v31 }
 0x3ce   : > { %v1390_v29 = vmul.f32 %v1388_v38, %v1388_v38  ;;  %v1391_v33 = vmul.f32 %v1389_v40, %v1389_v40 }
 0x3d0   : > { %v1392_v7 = vsel %vm1377_vm10, %v1390_v29, 0.0  ;;  %v1393_v4 = vsel %vm1377_vm10, %v1391_v33, 0.0 }
 0x3d1   : > { %v1394_v5 = vadd.f32 %v1393_v4, %v1392_v7 }
 0x3d3   : > { %v1395_v12 = vrot.slane %v1394_v5, 4 }
 0x3d5   : > { %v1396_v46 = vadd.f32 %v1395_v12, %v1394_v5 }
 0x3d7   : > { %v1397_v41 = vrot.slane %v1396_v46, 2 }
 0x3d9   : > { %v1398_v54 = vadd.f32 %v1397_v41, %v1396_v46 }
 0x3db   : > { %v1399_v61 = vrot.slane %v1398_v54, 1 }
 0x3dd   : > { %v1400_v28 = vadd.f32 %v1399_v61, %v1398_v54 }
 0x3df   : > { %v1401_v44 = vmul.f32 0.0625, %v1400_v28 }
 0x3e1   : > { %v1402_v30 = vadd.f32 1e-05, %v1401_v44 }
 0x3e3   : > { %1704 = vrsqrt.f32 %v1402_v30 }
 0x3f0   : > { %v1705_v49 = vpop.eup %1704 }
 0x3f1   : > { %v1404_v47 = vmul.f32 %v1705_v49, %v1388_v38  ;;  %v1405_v51 = vmul.f32 %v1705_v49, %v1389_v40 }
 0x3f3   : > { %v1412_v0 = vmul.f32 %v1496_v48, %v1404_v47  ;;  %v1413_v22 = vmul.f32 %v1496_v48, %v1405_v51 }
 0x3f5   : > { %v1420_v17 = vadd.f32 %v1497_v52, %v1412_v0  ;;  %v1421_v42 = vadd.f32 %v1497_v52, %v1413_v22 }
 0x3f7   : > { %1422 = vst.msk [vmem:[#allocation3] sm:$0xff] %vm1377_vm10, %v1420_v17  ;;  %1423 = vst.msk [vmem:[#allocation3 + $0x8] sm:$0xff] %vm1377_vm10, %v1421_v42 }
 0x3f8 PF: > { %p1606_p5 = scmp.eq.s32.totalorder %s1813_s18, 1  ;;  %s1744_s27 = smov [#allocation3]  }
 0x3f9   : > { %s1430_s28 = sshll.u32 %s1744_s27, 4  ;;  %s1431_s28 = int_to_ptr.vmem [resolvable:$true] %s1430_s28 }
 0x3fa   : > { %s1706_s29 = scalar_lea.vmem %s1431_s28, 256  ;;  %p1713_p9 = scmp.lt.s32.totalorder %s1431_s28, %s1431_s28 }
 0x3fb   : > { %p1707_p6 = scmp.ne.s32.totalorder %s1431_s28, %s1706_s29  ;;  %p1714_p10 = scmp.lt.s32.totalorder %s1706_s29, %s1706_s29 }
 0x3fd   : > { %p1708_p7 = pnand %p1707_p6, %p1606_p5  ;;  %p1715_p11 = por %p1714_p10, %p1713_p9 }
 0x3ff   : > { %p1709_p8 = pneg %p1708_p7 }
 0x401   : > { %p1716_p12 = pnand %p1715_p11, %p1709_p8 }
 0x403   : > { %1719 = shalt.err (!%p1716_p12)
}
 0x404   : > { %s1745_s30 = smov 128   ;;  %s1746_s12 = smov 8  }
 0x405   : > { %1603 = dma.vmem_to_hbm [thread:$0]  (%p1606_p5), %s1431_s28, 256, %s2197_s11, [#allocation4], %s1745_s30, %s1745_s30, %s1746_s12  }
 0x406   : > { %1735 = dma.done.wait (%p1606_p5), [#allocation4], 256  }
 0x407   : > { %1737 = vsyncadd (%p1606_p5), [#allocation4], 4294967040 }
 0x408 PF: > { %s22_s17 = sadd.s32 1, %s1740_s17  }
 0x409   : > { %p19_p13 = scmp.ge.s32.totalorder %s22_s17, 4  }
 0x40b   :  { %21 = sbr.rel (!%p19_p13) target bundleno = 1 (0x1), region = 96 }
 0x410   :  { %1446 = vsyncpa [#allocation4], 1 }
 0x411   :  { %1448 = vsyncpa [#allocation4 + $0x1], 1 }

</bundles_post_ra>
